<compile_context>
chip_gen: v6e
topology: v6e:2x2x1
jax: 0.10.0
libtpu: 0.0.40
codegen_flags: <defaults>
</compile_context>

<pallas_src>
import functools

import jax
import jax.numpy as jnp
from jax.experimental import pallas as pl
from jax.experimental.pallas import tpu as pltpu

NUM_SPECIES = 9
NUM_FEATURES = 128        # stand-in for resnet50's 2048-dim feature vector
HEAD_DIM = 1 + 1 + NUM_SPECIES + 4   # obj, cat_or_dog, species, bbox = 15
PACKED_DIM = 16                      # padded to 16 packed output columns


def _stem_heads_kernel(x_ref, w_stem_ref, b_stem_ref, w_heads_ref, b_heads_ref,
                       out_ref, acc_ref, *, inv_hw):
    """Grid = (B, HW_tiles).  One batch element per b, one pixel tile per k."""
    k = pl.program_id(1)

    @pl.when(k == 0)
    def _init():
        acc_ref[...] = jnp.zeros_like(acc_ref)

    # ---- backbone surrogate: 1x1 conv (K=C matmul) + ReLU, partial pooling ----
    x = x_ref[0]                                   # (C, T) bf16, pixels on lanes
    fmap = jnp.dot(w_stem_ref[...], x,             # (F, C) @ (C, T) -> (F, T)
                   preferred_element_type=jnp.float32)
    fmap = jnp.maximum(fmap + b_stem_ref[...], 0.0)           # bias + ReLU (f32)
    acc_ref[...] += jnp.sum(fmap, axis=1, keepdims=True)      # (F, 1) partial sum

    # ---- finalize: global average pool + fused heads + activations ----
    @pl.when(k == pl.num_programs(1) - 1)
    def _finalize():
        feat = acc_ref[...] * inv_hw                          # (F, 1)
        h = jnp.dot(w_heads_ref[...], feat,                   # (16, F) @ (F, 1)
                    preferred_element_type=jnp.float32) + b_heads_ref[...]

        row = jax.lax.broadcasted_iota(jnp.int32, h.shape, 0)  # (16, 1)

        # row 0: object_present -> sigmoid (EUP approx reciprocal)
        sig = pl.reciprocal(1.0 + jnp.exp(-h), approx=True)

        # rows 2..10: species -> softmax over the 9 species rows
        sp_mask = (row >= 2) & (row < 2 + NUM_SPECIES)
        sp_logits = jnp.where(sp_mask, h, jnp.full_like(h, -1e30))
        sp_max = jnp.max(sp_logits, axis=0, keepdims=True)
        sp_exp = jnp.where(sp_mask, jnp.exp(sp_logits - sp_max), 0.0)
        sp_sum = jnp.sum(sp_exp, axis=0, keepdims=True)
        sp = sp_exp * pl.reciprocal(sp_sum, approx=True)

        # rows 1 (cat_or_dog) and 11..14 (bbox) stay raw logits; row 15 is pad.
        out = jnp.where(row == 0, sig, h)
        out = jnp.where(sp_mask, sp, out)
        out = jnp.where(row >= HEAD_DIM, 0.0, out)
        out_ref[0] = out                                       # (16, 1)


def init_params(key, in_channels):
    """Deterministic PyTorch-style (uniform +/- 1/sqrt(fan_in)) init, packed."""
    f = NUM_FEATURES

    def uniform(k, shape, fan_in):
        bound = 1.0 / float(fan_in) ** 0.5
        return jax.random.uniform(k, shape, jnp.float32, -bound, bound)

    ks = jax.random.split(key, 10)
    w_stem = uniform(ks[0], (in_channels, f), in_channels)     # (C, F)
    b_stem = uniform(ks[1], (f,), in_channels)
    w_obj = uniform(ks[2], (f, 1), f); b_obj = uniform(ks[3], (1,), f)
    w_cd  = uniform(ks[4], (f, 1), f); b_cd  = uniform(ks[5], (1,), f)
    w_sp  = uniform(ks[6], (f, NUM_SPECIES), f); b_sp = uniform(ks[7], (NUM_SPECIES,), f)
    w_bb  = uniform(ks[8], (f, 4), f); b_bb  = uniform(ks[9], (4,), f)

    # Fuse the four heads into one (F, 16) weight / (16,) bias (last col = pad).
    pad_w = jnp.zeros((f, PACKED_DIM - HEAD_DIM), jnp.float32)
    pad_b = jnp.zeros((PACKED_DIM - HEAD_DIM,), jnp.float32)
    w_heads = jnp.concatenate([w_obj, w_cd, w_sp, w_bb, pad_w], axis=1)   # (F, 16)
    b_heads = jnp.concatenate([b_obj, b_cd, b_sp, b_bb, pad_b])           # (16,)

    return (w_stem.T,                       # (F, C)  for dot(w, x)
            b_stem.reshape(f, 1),           # (F, 1)
            w_heads.T,                      # (16, F) for dot(W, feat_col)
            b_heads.reshape(PACKED_DIM, 1)) # (16, 1)


def _pick_tile(hw):
    t = min(hw, 2048)
    t = (t // 128) * 128
    while hw % t != 0:
        t -= 128
    return t


def custom_model_forward(x_nchw, params):
    w_stem_t, b_stem_col, w_heads_t, b_heads_col = params
    b, c, h, w = x_nchw.shape
    hw = h * w
    f = NUM_FEATURES
    # TODO(synk): HW not a multiple of 128 would need masked accumulation.
    assert hw % 128 == 0, "spatial size must be a multiple of 128"
    tile = _pick_tile(hw)

    # Lane-dense layout: (B, C, HW), pixels on lanes; bf16 halves HBM traffic.
    x = x_nchw.reshape(b, c, hw).astype(jnp.bfloat16)
    w_stem_bf16 = w_stem_t.astype(jnp.bfloat16)

    grid = (b, hw // tile)
    kernel = functools.partial(_stem_heads_kernel, inv_hw=1.0 / float(hw))

    packed = pl.pallas_call(
        kernel,
        out_shape=jax.ShapeDtypeStruct((b, PACKED_DIM, 1), jnp.float32),
        grid_spec=pltpu.PrefetchScalarGridSpec(
            num_scalar_prefetch=0,
            grid=grid,
            in_specs=[
                pl.BlockSpec((1, c, tile), lambda bi, ki: (bi, 0, ki)),   # x
                pl.BlockSpec((f, c), lambda bi, ki: (0, 0)),              # stem W^T
                pl.BlockSpec((f, 1), lambda bi, ki: (0, 0)),              # stem b
                pl.BlockSpec((PACKED_DIM, f), lambda bi, ki: (0, 0)),     # heads W^T
                pl.BlockSpec((PACKED_DIM, 1), lambda bi, ki: (0, 0)),     # heads b
            ],
            out_specs=pl.BlockSpec((1, PACKED_DIM, 1), lambda bi, ki: (bi, 0, 0)),
            scratch_shapes=[pltpu.VMEM((f, 1), jnp.float32)],             # pooled acc
        ),
        compiler_params=pltpu.CompilerParams(
            dimension_semantics=("parallel", "arbitrary"),
            vmem_limit_bytes=32 * 1024 * 1024,   # fits all gens incl. v7x's 64 MiB
        ),
    )(x, w_stem_bf16, b_stem_col, w_heads_t, b_heads_col)

    out = packed[:, :, 0]                                   # (B, 16)
    object_present = out[:, 0:1]
    cat_or_dog = out[:, 1:2]
    species_probs = out[:, 2:2 + NUM_SPECIES]
    bbox = out[:, 2 + NUM_SPECIES:HEAD_DIM]
    return object_present, cat_or_dog, species_probs, bbox


def reference_forward(x_nchw, params):
    """Pure-JAX reference of the same surrogate forward (bf16 input rounding)."""
    w_stem_t, b_stem_col, w_heads_t, b_heads_col = params
    b, c, h, w = x_nchw.shape
    x = x_nchw.astype(jnp.bfloat16).astype(jnp.float32).reshape(b, c, h * w)
    w_stem = w_stem_t.astype(jnp.bfloat16).astype(jnp.float32)
    fmap = jnp.einsum("fc,bcp->bfp", w_stem, x)
    fmap = jnp.maximum(fmap + b_stem_col[None, :, :], 0.0)
    feat = jnp.mean(fmap, axis=2)                            # (B, F)
    hd = feat @ w_heads_t.T + b_heads_col[:, 0]              # (B, 16)
    obj = jax.nn.sigmoid(hd[:, 0:1])
    cd = hd[:, 1:2]
    sp = jax.nn.softmax(hd[:, 2:2 + NUM_SPECIES], axis=-1)
    bb = hd[:, 2 + NUM_SPECIES:HEAD_DIM]
    return obj, cd, sp, bb


if __name__ == "__main__":
    key = jax.random.PRNGKey(0)
    k_x, k_p = jax.random.split(key)

    B, C, H, W = 2, 4, 16, 16
    x = jax.random.normal(k_x, (B, C, H, W), jnp.float32)
    params = init_params(k_p, in_channels=C)

    outs = jax.block_until_ready(custom_model_forward(x, params))
    obj, cd, sp, bb = outs

    assert obj.shape == (B, 1)
    assert cd.shape == (B, 1)
    assert sp.shape == (B, NUM_SPECIES)
    assert bb.shape == (B, 4)

    # Sanity: softmax rows sum ~1 (approx reciprocal), sigmoid in (0, 1).
    assert bool(jnp.all(jnp.abs(jnp.sum(sp, axis=-1) - 1.0) < 5e-3))
    assert bool(jnp.all((obj > 0.0) & (obj < 1.0)))

    # Compare against the pure-JAX reference of the same surrogate.
    refs = reference_forward(x, params)
    for got, ref in zip(outs, refs):
        assert jnp.allclose(got, ref, rtol=1e-2, atol=1e-2)

    print("KERNEL_OK")
</pallas_src>

<mosaic_0001>
module attributes {stable_mosaic.version = 11 : i64} {
  func.func @_stem_heads_kernel(%arg0: i32, %arg1: i32, %arg2: memref<1x4x256xbf16, #tpu.memory_space<vmem>>, %arg3: memref<128x4xbf16, #tpu.memory_space<vmem>>, %arg4: memref<128x1xf32, #tpu.memory_space<vmem>>, %arg5: memref<16x128xf32, #tpu.memory_space<vmem>>, %arg6: memref<16x1xf32, #tpu.memory_space<vmem>>, %arg7: memref<1x16x1xf32, #tpu.memory_space<vmem>>, %arg8: memref<128x1xf32, #tpu.memory_space<vmem>>) attributes {dimension_semantics = [#tpu.dimension_semantics<parallel>, #tpu.dimension_semantics<arbitrary>], iteration_bounds = array<i64: 2, 1>, scalar_prefetch = 0 : i64, scratch_operands = 1 : i64, tpu.core_type = #tpu.core_type<tc>, window_params = [{transform_indices = @transform_0, window_bounds = array<i64: 1, 4, 256>}, {pipeline_mode = #tpu.pipeline_mode<synchronous>, transform_indices = @transform_1, window_bounds = array<i64: 128, 4>}, {pipeline_mode = #tpu.pipeline_mode<synchronous>, transform_indices = @transform_2, window_bounds = array<i64: 128, 1>}, {pipeline_mode = #tpu.pipeline_mode<synchronous>, transform_indices = @transform_3, window_bounds = array<i64: 16, 128>}, {pipeline_mode = #tpu.pipeline_mode<synchronous>, transform_indices = @transform_4, window_bounds = array<i64: 16, 1>}, {transform_indices = @transform_5, window_bounds = array<i64: 1, 16, 1>}]} {
    %c0_i32 = arith.constant 0 : i32
    %0 = arith.cmpi eq, %arg1, %c0_i32 : i32
    %1 = arith.extui %0 : i1 to i32
    %c0_i32_0 = arith.constant 0 : i32
    %2 = arith.cmpi ne, %1, %c0_i32_0 : i32
    scf.if %2 {
      %cst_15 = arith.constant 0.000000e+00 : f32
      %20 = vector.broadcast %cst_15 : f32 to vector<128x1xf32>
      %c0_16 = arith.constant 0 : index
      %c0_17 = arith.constant 0 : index
      %21 = vector.load %arg8[%c0_16, %c0_17] : memref<128x1xf32, #tpu.memory_space<vmem>>, vector<128x1xf32>
      tpu.vector_store %arg8[%c0_16, %c0_17], %20 {strides = array<i32>} : memref<128x1xf32, #tpu.memory_space<vmem>>, vector<128x1xf32>,
    } else {
    }
    %c0 = arith.constant 0 : index
    %c0_1 = arith.constant 0 : index
    %c0_2 = arith.constant 0 : index
    %3 = vector.load %arg2[%c0, %c0_1, %c0_2] : memref<1x4x256xbf16, #tpu.memory_space<vmem>>, vector<1x4x256xbf16>
    %4 = vector.shape_cast %3 : vector<1x4x256xbf16> to vector<4x256xbf16>
    %c0_3 = arith.constant 0 : index
    %c0_4 = arith.constant 0 : index
    %5 = vector.load %arg3[%c0_3, %c0_4] : memref<128x4xbf16, #tpu.memory_space<vmem>>, vector<128x4xbf16>
    %cst = arith.constant dense<0.000000e+00> : vector<128x256xf32>
    %6 = tpu.matmul %5, %4, %cst {dimension_numbers = #tpu.dot_dimension_numbers<[1], [0], [0], [1], [0, 0, 1, 1], [], []>} : vector<128x4xbf16>, vector<4x256xbf16>, vector<128x256xf32> -> vector<128x256xf32>
    %c0_5 = arith.constant 0 : index
    %c0_6 = arith.constant 0 : index
    %7 = vector.load %arg4[%c0_5, %c0_6] : memref<128x1xf32, #tpu.memory_space<vmem>>, vector<128x1xf32>
    %8 = vector.broadcast %7 : vector<128x1xf32> to vector<128x256xf32>
    %9 = arith.addf %6, %8 : vector<128x256xf32>
    %cst_7 = arith.constant 0.000000e+00 : f32
    %10 = vector.broadcast %cst_7 : f32 to vector<128x256xf32>
    %11 = arith.maximumf %9, %10 : vector<128x256xf32>
    %c0_8 = arith.constant 0 : index
    %c0_9 = arith.constant 0 : index
    %12 = vector.load %arg8[%c0_8, %c0_9] : memref<128x1xf32, #tpu.memory_space<vmem>>, vector<128x1xf32>
    %cst_10 = arith.constant dense<0.000000e+00> : vector<128xf32>
    %13 = vector.multi_reduction <add>, %11, %cst_10 [1] : vector<128x256xf32> to vector<128xf32>
    %14 = vector.shape_cast %13 : vector<128xf32> to vector<128x1xf32>
    %15 = arith.addf %12, %14 : vector<128x1xf32>
    %c0_11 = arith.constant 0 : index
    %c0_12 = arith.constant 0 : index
    %16 = vector.load %arg8[%c0_11, %c0_12] : memref<128x1xf32, #tpu.memory_space<vmem>>, vector<128x1xf32>
    tpu.vector_store %arg8[%c0_11, %c0_12], %15 {strides = array<i32>} : memref<128x1xf32, #tpu.memory_space<vmem>>, vector<128x1xf32>,
    %c0_i32_13 = arith.constant 0 : i32
    %17 = arith.cmpi eq, %arg1, %c0_i32_13 : i32
    %18 = arith.extui %17 : i1 to i32
    %c0_i32_14 = arith.constant 0 : i32
    %19 = arith.cmpi ne, %18, %c0_i32_14 : i32
    scf.if %19 {
      %c0_15 = arith.constant 0 : index
      %c0_16 = arith.constant 0 : index
      %20 = vector.load %arg8[%c0_15, %c0_16] : memref<128x1xf32, #tpu.memory_space<vmem>>, vector<128x1xf32>
      %cst_17 = arith.constant 3.906250e-03 : f32
      %21 = vector.broadcast %cst_17 : f32 to vector<128x1xf32>
      %22 = arith.mulf %20, %21 : vector<128x1xf32>
      %c0_18 = arith.constant 0 : index
      %c0_19 = arith.constant 0 : index
      %23 = vector.load %arg5[%c0_18, %c0_19] : memref<16x128xf32, #tpu.memory_space<vmem>>, vector<16x128xf32>
      %cst_20 = arith.constant dense<0.000000e+00> : vector<16x1xf32>
      %24 = tpu.matmul %23, %22, %cst_20 {dimension_numbers = #tpu.dot_dimension_numbers<[1], [0], [0], [1], [0, 0, 1, 1], [], []>} : vector<16x128xf32>, vector<128x1xf32>, vector<16x1xf32> -> vector<16x1xf32>
      %c0_21 = arith.constant 0 : index
      %c0_22 = arith.constant 0 : index
      %25 = vector.load %arg6[%c0_21, %c0_22] : memref<16x1xf32, #tpu.memory_space<vmem>>, vector<16x1xf32>
      %26 = arith.addf %24, %25 : vector<16x1xf32>
      %27 = tpu.iota {dimensions = array<i32: 0>} : vector<16x1xi32>
      %cst_23 = arith.constant 0.000000e+00 : f32
      %28 = vector.broadcast %cst_23 : f32 to vector<16x1xf32>
      %29 = arith.subf %28, %26 : vector<16x1xf32>
      %30 = math.exp %29 : vector<16x1xf32>
      %cst_24 = arith.constant 1.000000e+00 : f32
      %31 = vector.broadcast %cst_24 : f32 to vector<16x1xf32>
      %32 = arith.addf %31, %30 : vector<16x1xf32>
      %33 = tpu.reciprocal %32 {approx = true} : vector<16x1xf32> -> vector<16x1xf32>
      %c2_i32 = arith.constant 2 : i32
      %34 = vector.broadcast %c2_i32 : i32 to vector<16x1xi32>
      %35 = arith.cmpi sge, %27, %34 : vector<16x1xi32>
      %c11_i32 = arith.constant 11 : i32
      %36 = vector.broadcast %c11_i32 : i32 to vector<16x1xi32>
      %37 = arith.cmpi slt, %27, %36 : vector<16x1xi32>
      %38 = arith.andi %35, %37 : vector<16x1xi1>
      %cst_25 = arith.constant -1.000000e+30 : f32
      %39 = vector.broadcast %cst_25 : f32 to vector<16x1xf32>
      %40 = arith.select %38, %26, %39 : vector<16x1xi1>, vector<16x1xf32>
      %cst_26 = arith.constant dense<0xFF800000> : vector<1xf32>
      %41 = vector.multi_reduction <maximumf>, %40, %cst_26 [0] : vector<16x1xf32> to vector<1xf32>
      %42 = vector.shape_cast %41 : vector<1xf32> to vector<1x1xf32>
      %43 = vector.broadcast %42 : vector<1x1xf32> to vector<16x1xf32>
      %44 = arith.subf %40, %43 : vector<16x1xf32>
      %45 = math.exp %44 : vector<16x1xf32>
      %cst_27 = arith.constant 0.000000e+00 : f32
      %46 = vector.broadcast %cst_27 : f32 to vector<16x1xf32>
      %47 = arith.select %38, %45, %46 : vector<16x1xi1>, vector<16x1xf32>
      %cst_28 = arith.constant dense<0.000000e+00> : vector<1xf32>
      %48 = vector.multi_reduction <add>, %47, %cst_28 [0] : vector<16x1xf32> to vector<1xf32>
      %49 = vector.shape_cast %48 : vector<1xf32> to vector<1x1xf32>
      %50 = tpu.reciprocal %49 {approx = true} : vector<1x1xf32> -> vector<1x1xf32>
      %51 = vector.broadcast %50 : vector<1x1xf32> to vector<16x1xf32>
      %52 = arith.mulf %47, %51 : vector<16x1xf32>
      %c0_i32_29 = arith.constant 0 : i32
      %53 = vector.broadcast %c0_i32_29 : i32 to vector<16x1xi32>
      %54 = arith.cmpi eq, %27, %53 : vector<16x1xi32>
      %55 = arith.select %54, %33, %26 : vector<16x1xi1>, vector<16x1xf32>
      %56 = arith.select %38, %52, %55 : vector<16x1xi1>, vector<16x1xf32>
      %c15_i32 = arith.constant 15 : i32
      %57 = vector.broadcast %c15_i32 : i32 to vector<16x1xi32>
      %58 = arith.cmpi sge, %27, %57 : vector<16x1xi32>
      %cst_30 = arith.constant 0.000000e+00 : f32
      %59 = vector.broadcast %cst_30 : f32 to vector<16x1xf32>
      %60 = arith.select %58, %59, %56 : vector<16x1xi1>, vector<16x1xf32>
      %c0_31 = arith.constant 0 : index
      %c0_32 = arith.constant 0 : index
      %c0_33 = arith.constant 0 : index
      %61 = vector.load %arg7[%c0_31, %c0_32, %c0_33] : memref<1x16x1xf32, #tpu.memory_space<vmem>>, vector<1x16x1xf32>
      %62 = vector.shape_cast %61 : vector<1x16x1xf32> to vector<16x1xf32>
      %63 = vector.shape_cast %60 : vector<16x1xf32> to vector<1x16x1xf32>
      tpu.vector_store %arg7[%c0_31, %c0_32, %c0_33], %63 {strides = array<i32>} : memref<1x16x1xf32, #tpu.memory_space<vmem>>, vector<1x16x1xf32>,
    } else {
    }
    return
  }
  func.func @transform_0(%arg0: i32, %arg1: i32) -> (i32, i32, i32) {
    %c0_i32 = arith.constant 0 : i32
    %c0_i32_0 = arith.constant 0 : i32
    return %arg0, %c0_i32, %arg1 : i32, i32, i32
  }
  func.func @transform_1(%arg0: i32, %arg1: i32) -> (i32, i32) {
    %c0_i32 = arith.constant 0 : i32
    %c0_i32_0 = arith.constant 0 : i32
    %c0_i32_1 = arith.constant 0 : i32
    return %c0_i32, %c0_i32_0 : i32, i32
  }
  func.func @transform_2(%arg0: i32, %arg1: i32) -> (i32, i32) {
    %c0_i32 = arith.constant 0 : i32
    %c0_i32_0 = arith.constant 0 : i32
    %c0_i32_1 = arith.constant 0 : i32
    return %c0_i32, %c0_i32_0 : i32, i32
  }
  func.func @transform_3(%arg0: i32, %arg1: i32) -> (i32, i32) {
    %c0_i32 = arith.constant 0 : i32
    %c0_i32_0 = arith.constant 0 : i32
    %c0_i32_1 = arith.constant 0 : i32
    return %c0_i32, %c0_i32_0 : i32, i32
  }
  func.func @transform_4(%arg0: i32, %arg1: i32) -> (i32, i32) {
    %c0_i32 = arith.constant 0 : i32
    %c0_i32_0 = arith.constant 0 : i32
    %c0_i32_1 = arith.constant 0 : i32
    return %c0_i32, %c0_i32_0 : i32, i32
  }
  func.func @transform_5(%arg0: i32, %arg1: i32) -> (i32, i32, i32) {
    %c0_i32 = arith.constant 0 : i32
    %c0_i32_0 = arith.constant 0 : i32
    %c0_i32_1 = arith.constant 0 : i32
    return %arg0, %c0_i32, %c0_i32_0 : i32, i32, i32
  }
}

</mosaic_0001>

<bundles_post_ra>
// kernel: tpu_custom_call.1
= control target key start
LH: loop header
LB: loop body
LE: loop exit
PB: predicated region body
PF: predicated region fallthrough
CT: control target
= control target key end

     0   :  { %s1144_s18 = smov 0   ;;  %s1146_s19 = smov 0   ;;  %s1362_s0 = inlined_call_operand.vmem [shape: bf16[2,4,256], index: 0, kind: input, shape index: {}]   ;;  %s1363_s1 = inlined_call_operand.vmem [shape: bf16[128,4], index: 1, kind: input, shape index: {}]   ;;  %s1364_s2 = inlined_call_operand.vmem [shape: f32[128,1], index: 2, kind: input, shape index: {}]   ;;  %s1365_s3 = inlined_call_operand.vmem [shape: f32[16,128], index: 3, kind: input, shape index: {}]   ;;  %s1366_s4 = inlined_call_operand.vmem [shape: f32[16,1], index: 4, kind: input, shape index: {}]   ;;  %s1367_s5 = inlined_call_operand.vmem [shape: f32[2,16,1], index: 5, kind: output, shape index: {}]  }
   0x1   :  { %s1148_s20 = smov 0  }
   0x2 LB: > { %s27_s21 = sadd.s32 1, %s1106_s19  ;;  %p960_p0 = scmp.ge.s32.totalorder %s1110_s20, 1  ;;  %s1110_s20 = sphi %s1148_s20, %s15_s20   ;;  %s1106_s19 = sphi %s1146_s19, %s1369_s19   ;;  %s1102_s18 = sphi %s1144_s18, %s1368_s18  }
   0x3   : > { %p29_p1 = scmp.ge.s32.totalorder %s27_s21, 2  ;;  %p206_p2 = scmp.lt.s32.totalorder %s1110_s20, 3 }
   0x5   : > { %s1371_s21 = smov (%p29_p1, %s27_s21), 0  ;;  %p207_p3 = pnand %p960_p0, %p206_p2 }
   0x6   : > { %p239_p4 = scmp.lt.s32.totalorder (!%p207_p3), %s1102_s18, 1 }
   0x7   : > { %210 = sbr.rel (%p207_p3) target bundleno = 703 (0x2bf), region = 40 }
   0xc   : > { %v1112_v0 = vmov 0   ;;  %s1373_s18 = smov (!%p239_p4, %s1102_s18), 1  ;;  %vm462_vm0 = vcmask 1041408   ;;  %v305_v4 = vld [vmem:[%s1364_s2 + $0x68] sm:$0xff]  ;;  %v1070_v5 = vld [vmem:[%s1363_s1] sm:$0xff]   ;;  %v307_v7 = vld [vmem:[%s1364_s2 + $0x78] sm:$0xff] }
   0xd   : > { %501 = vmatprep.mubr.bf16.mxu0 %v1112_v0  ;;  %541 = vmatprep.mubr.bf16.mxu1 %v1112_v0  ;;  %s985_s22 = sshll.u32 %s1373_s18, 2  ;;  %v1071_v6 = vld [vmem:[%s1363_s1 + $0x20] sm:$0xff]   ;;  %vm437_vm1 = vcmask 31744   ;;  %v306_v9 = vld [vmem:[%s1364_s2 + $0x70] sm:$0xff]  ;;  %v303_v11 = vld [vmem:[%s1364_s2 + $0x58] sm:$0xff]  ;;  %vm258_vm2 = vcmask 7168  }
   0xe   : > { %1069 = vset.pattern.permute.xlu1 %v1112_v0  ;;  %1068 = vset.pattern.permute.xlu0 %v1112_v0  ;;  %s246_s25 = scalar_lea.vmem %s1362_s0, %s985_s22  ;;  %v304_v8 = vld [vmem:[%s1364_s2 + $0x60] sm:$0xff]  ;;  %v302_v10 = vld [vmem:[%s1364_s2 + $0x50] sm:$0xff]  ;;  %v1072_v12 = vld [vmem:[%s1363_s1 + $0x8] sm:$0xff]   ;;  %v1113_v28 = vmov 0.0   ;;  %s986_s15 = sshll.u32 %s1373_s18, 4 }
   0xf   : > { %v973_v1 = vld.sshfl [vmem:[%s246_s25] sm:$0x33 pattern:$0x76325410]  ;;  %375 = vperm.xlu1 %1069, %v305_v4   ;;  %385 = vperm.xlu0 %1068, %v307_v7   ;;  %v1073_v13 = vld [vmem:[%s1363_s1 + $0x28] sm:$0xff]   ;;  %v299_v16 = vld [vmem:[%s1364_s2 + $0x38] sm:$0xff]  ;;  %s252_s22 = scalar_lea.vmem %s1367_s5, %s986_s15 }
  0x10   : > { %v436_v2 = vcombine.high %v973_v1, %v973_v1  ;;  %v464_v3 = vsel %vm462_vm0, %v973_v1, 0  ;;  %v300_v14 = vld [vmem:[%s1364_s2 + $0x40] sm:$0xff]  ;;  %v301_v15 = vld [vmem:[%s1364_s2 + $0x48] sm:$0xff]  ;;  %v298_v17 = vld [vmem:[%s1364_s2 + $0x30] sm:$0xff]  ;;  %273 = vst.msk [vmem:[#allocation2 + $0x70] sm:$0xff] %vm258_vm2, %v1113_v28 }
  0x11   : > { %v1074_v18 = vld [vmem:[%s1363_s1 + $0x10] sm:$0xff]   ;;  %v297_v20 = vld [vmem:[%s1364_s2 + $0x28] sm:$0xff]  ;;  %v296_v21 = vld [vmem:[%s1364_s2 + $0x20] sm:$0xff]  ;;  %259 = vst.msk [vmem:[#allocation2] sm:$0xff] %vm258_vm2, %v1113_v28 }
  0x12   : > { %974 = vmatprep.subr.msk.bf16.mxu0 %vm462_vm0, %v436_v2  ;;  %1040 = vmatprep.subr.msk.bf16.mxu1 %vm462_vm0, %v436_v2  ;;  %v1075_v19 = vld [vmem:[%s1363_s1 + $0x30] sm:$0xff]   ;;  %v295_v22 = vld [vmem:[%s1364_s2 + $0x18] sm:$0xff]  ;;  %v293_v26 = vld [vmem:[%s1364_s2 + $0x8] sm:$0xff]  ;;  %260 = vst.msk [vmem:[#allocation2 + $0x8] sm:$0xff] %vm258_vm2, %v1113_v28 }
  0x13   : > { %484 = vmatpush1.bf16.msra.mxu0 %v464_v3  ;;  %1041 = vmatpush1.bf16.msra.mxu1 %v464_v3  ;;  %v294_v23 = vld [vmem:[%s1364_s2 + $0x10] sm:$0xff]  ;;  %v1076_v24 = vld [vmem:[%s1363_s1 + $0x18] sm:$0xff]   ;;  %v292_v27 = vld [vmem:[%s1364_s2] sm:$0xff]  ;;  %261 = vst.msk [vmem:[#allocation2 + $0x10] sm:$0xff] %vm258_vm2, %v1113_v28 }
  0x14   : > { %370 = vperm.xlu1 %1069, %v304_v8   ;;  %380 = vperm.xlu0 %1068, %v306_v9   ;;  %v1077_v25 = vld [vmem:[%s1363_s1 + $0x38] sm:$0xff]   ;;  %262 = vst.msk [vmem:[#allocation2 + $0x18] sm:$0xff] %vm258_vm2, %v1113_v28  ;;  %263 = vst.msk [vmem:[#allocation2 + $0x20] sm:$0xff] %vm258_vm2, %v1113_v28 }
  0x15   : > { %264 = vst.msk [vmem:[#allocation2 + $0x28] sm:$0xff] %vm258_vm2, %v1113_v28  ;;  %265 = vst.msk [vmem:[#allocation2 + $0x30] sm:$0xff] %vm258_vm2, %v1113_v28 }
  0x16   : > { %975 = vmatmul.mubr.msk.bf16.vlgmr.msra.gmra.mxu0 %vm437_vm1, %v1070_v5  ;;  %979 = vmatmul.mubr.msk.bf16.vlgmr.msra.gmra.mxu1 %vm437_vm1, %v1071_v6  ;;  %266 = vst.msk [vmem:[#allocation2 + $0x38] sm:$0xff] %vm258_vm2, %v1113_v28  ;;  %267 = vst.msk [vmem:[#allocation2 + $0x40] sm:$0xff] %vm258_vm2, %v1113_v28 }
  0x17   : > { %511 = vmatprep.mubr.bf16.mxu0 %v1112_v0  ;;  %551 = vmatprep.mubr.bf16.mxu1 %v1112_v0  ;;  %268 = vst.msk [vmem:[#allocation2 + $0x48] sm:$0xff] %vm258_vm2, %v1113_v28  ;;  %269 = vst.msk [vmem:[#allocation2 + $0x50] sm:$0xff] %vm258_vm2, %v1113_v28 }
  0x18   : > { %360 = vperm.xlu1 %1069, %v302_v10   ;;  %365 = vperm.xlu0 %1068, %v303_v11   ;;  %270 = vst.msk [vmem:[#allocation2 + $0x58] sm:$0xff] %vm258_vm2, %v1113_v28  ;;  %271 = vst.msk [vmem:[#allocation2 + $0x60] sm:$0xff] %vm258_vm2, %v1113_v28 }
  0x19   : > { %272 = vst.msk [vmem:[#allocation2 + $0x68] sm:$0xff] %vm258_vm2, %v1113_v28  ;;  %274 = vst.msk [vmem:[#allocation2 + $0x78] sm:$0xff] %vm258_vm2, %v1113_v28 }
  0x1c   : > { %350 = vperm.xlu1 %1069, %v300_v14   ;;  %355 = vperm.xlu0 %1068, %v301_v15  }
  0x1e   : > { %976 = vmatmul.mubr.msk.bf16.gmra.mxu0 %vm437_vm1, %v1072_v12  ;;  %980 = vmatmul.mubr.msk.bf16.gmra.mxu1 %vm437_vm1, %v1073_v13 }
  0x1f   : > { %521 = vmatprep.mubr.bf16.mxu0 %v1112_v0  ;;  %561 = vmatprep.mubr.bf16.mxu1 %v1112_v0 }
  0x20   : > { %345 = vperm.xlu0 %1068, %v299_v16   ;;  %340 = vperm.xlu1 %1069, %v298_v17  }
  0x24   : > { %335 = vperm.xlu0 %1068, %v297_v20   ;;  %330 = vperm.xlu1 %1069, %v296_v21  }
  0x26   : > { %977 = vmatmul.mubr.msk.bf16.gmra.mxu0 %vm437_vm1, %v1074_v18  ;;  %981 = vmatmul.mubr.msk.bf16.gmra.mxu1 %vm437_vm1, %v1075_v19 }
  0x27   : > { %531 = vmatprep.mubr.bf16.mxu0 %v1112_v0  ;;  %571 = vmatprep.mubr.bf16.mxu1 %v1112_v0 }
  0x28   : > { %325 = vperm.xlu0 %1068, %v295_v22   ;;  %320 = vperm.xlu1 %1069, %v294_v23  }
  0x2c   : > { %315 = vperm.xlu0 %1068, %v293_v26   ;;  %310 = vperm.xlu1 %1069, %v292_v27  }
  0x2e   : > { %978 = vmatmul.mubr.msk.bf16.gmra.mxu0 %vm437_vm1, %v1076_v24  ;;  %982 = vmatmul.mubr.msk.bf16.gmra.mxu1 %vm437_vm1, %v1077_v25 }
  0x8a   : > { %v386_v31 = vpop.permute.xlu0 %385  ;;  %v376_v48 = vpop.permute.xlu1 %375 }
  0x8f   : > { %v381_v38 = vpop.permute.xlu0 %380  ;;  %v371_v56 = vpop.permute.xlu1 %370 }
  0x93   : > { %v366_v45 = vpop.permute.xlu0 %365  ;;  %v361_v1 = vpop.permute.xlu1 %360 }
  0x97   : > { %v356_v53 = vpop.permute.xlu0 %355  ;;  %v351_v17 = vpop.permute.xlu1 %350 }
  0x9b   : > { %v346_v61 = vpop.permute.xlu0 %345 }
  0x9f   : > { %v336_v14 = vpop.permute.xlu0 %335 }
  0xd6   : > { %v1264_v29 = vpop.f32.mrf.mxu0  ;;  %v1266_v30 = vpop.f32.mrf.mxu1 }
  0xd8   : > { %v1268_v32 = vpop.f32.mrf.mxu0  ;;  %v1270_v33 = vpop.f32.mrf.mxu1 }
  0xda   : > { %v1272_v34 = vpop.f32.mrf.mxu0  ;;  %v547_v35 = vpop.f32.mrf.mxu1 }
  0xdb   : > { %v548_v18 = vadd.f32 %v547_v35, %v356_v53 }
  0xdc   : > { %v1274_v36 = vpop.f32.mrf.mxu0  ;;  %v549_v37 = vpop.f32.mrf.mxu1 }
  0xdd   : > { %v550_v11 = vadd.f32 %v549_v37, %v356_v53 }
  0xde   : > { %v1276_v39 = vpop.f32.mrf.mxu0  ;;  %v1278_v40 = vpop.f32.mrf.mxu1 }
  0xdf   : > { %v601_v24 = vmax.f32 %v550_v11, 0.0 }
  0xe0   : > { %v1280_v41 = vpop.f32.mrf.mxu0  ;;  %v555_v42 = vpop.f32.mrf.mxu1 }
  0xe1   : > { %v556_v35 = vadd.f32 %v555_v42, %v361_v1 }
  0xe2   : > { %v1282_v43 = vpop.f32.mrf.mxu0  ;;  %v557_v44 = vpop.f32.mrf.mxu1 }
  0xe3   : > { %v558_v8 = vadd.f32 %v557_v44, %v366_v45  ;;  %v600_v44 = vmax.f32 %v548_v18, 0.0 }
  0xe4   : > { %v1284_v46 = vpop.f32.mrf.mxu0  ;;  %v559_v47 = vpop.f32.mrf.mxu1 }
  0xe5   : > { %v560_v3 = vadd.f32 %v559_v47, %v366_v45  ;;  %v604_v23 = vmax.f32 %v558_v8, 0.0 }
  0xe6   : > { %v1286_v49 = vpop.f32.mrf.mxu0  ;;  %v563_v50 = vpop.f32.mrf.mxu1 }
  0xe7   : > { %v605_v15 = vmax.f32 %v560_v3, 0.0  ;;  %v564_v45 = vadd.f32 %v563_v50, %v371_v56  ;;  %v546_v50 = vadd.f32 %v1270_v33, %v351_v17 }
  0xe8   : > { %v1288_v51 = vpop.f32.mrf.mxu0  ;;  %v565_v52 = vpop.f32.mrf.mxu1 }
  0xe9   : > { %v566_v25 = vadd.f32 %v565_v52, %v371_v56  ;;  %v663_v37 = vadd.f32 %v605_v15, %v604_v23  ;;  %v606_v3 = vmax.f32 %v564_v45, 0.0 }
  0xea   : > { %v527_v54 = vpop.f32.mrf.mxu0  ;;  %v567_v55 = vpop.f32.mrf.mxu1 }
  0xeb   : > { %v568_v19 = vadd.f32 %v567_v55, %v376_v48  ;;  %v657_v55 = vadd.f32 %v601_v24, %v600_v44  ;;  %v746_v44 = vld [vmem:[%s1365_s3] sm:$0xff] }
  0xec   : > { %v529_v57 = vpop.f32.mrf.mxu0  ;;  %v569_v58 = vpop.f32.mrf.mxu1  ;;  %1037 = vmatprep.mubr.f32.mxu1 %v746_v44  ;;  %v614_v44 = vld [vmem:[#allocation2] sm:$0xff] }
  0xed   : > { %v570_v12 = vadd.f32 %v569_v58, %v376_v48  ;;  %v608_v47 = vmax.f32 %v568_v19, 0.0  ;;  %v326_v58 = vpop.permute.xlu0 %325  ;;  %v607_v48 = vmax.f32 %v566_v25, 0.0 }
  0xee   : > { %v1290_v59 = vpop.f32.mrf.mxu0  ;;  %v573_v60 = vpop.f32.mrf.mxu1  ;;  %v518_v42 = vadd.f32 %v1282_v43, %v326_v58 }
  0xef   : > { %v574_v62 = vadd.f32 %v573_v60, %v381_v38  ;;  %v609_v26 = vmax.f32 %v570_v12, 0.0  ;;  %v528_v60 = vadd.f32 %v527_v54, %v336_v14 }
  0xf0   : > { %v1292_v63 = vpop.f32.mrf.mxu0  ;;  %v575_v0 = vpop.f32.mrf.mxu1  ;;  %v588_v43 = vmax.f32 %v518_v42, 0.0 }
  0xf1   : > { %v576_v2 = vadd.f32 %v575_v0, %v381_v38  ;;  %v610_v9 = vmax.f32 %v574_v62, 0.0  ;;  %v669_v53 = vadd.f32 %v609_v26, %v608_v47  ;;  %v530_v62 = vadd.f32 %v529_v57, %v336_v14  ;;  %v316_v54 = vpop.permute.xlu0 %315  ;;  %v629_v47 = vld [vmem:[#allocation2 + $0x78] sm:$0xff] }
  0xf2   : > { %v577_v4 = vpop.f32.mrf.mxu1  ;;  %v537_v6 = vpop.f32.mrf.mxu0  ;;  %v592_v57 = vmax.f32 %v528_v60, 0.0  ;;  %v623_v60 = vld [vmem:[#allocation2 + $0x48] sm:$0xff] }
  0xf3   : > { %v611_v5 = vmax.f32 %v576_v2, 0.0  ;;  %v578_v7 = vadd.f32 %v577_v4, %v386_v31  ;;  %v538_v28 = vadd.f32 %v537_v6, %v346_v61  ;;  %v554_v2 = vadd.f32 %v1278_v40, %v361_v1 }
  0xf4   : > { %v579_v10 = vpop.f32.mrf.mxu1  ;;  %v539_v21 = vpop.f32.mrf.mxu0  ;;  %v603_v4 = vmax.f32 %v556_v35, 0.0  ;;  %v520_v6 = vadd.f32 %v1284_v46, %v326_v58  ;;  %v599_v1 = vmax.f32 %v546_v50, 0.0  ;;  %v510_v46 = vadd.f32 %v1274_v36, %v316_v54  ;;  %v625_v58 = vld [vmem:[#allocation2 + $0x58] sm:$0xff] }
  0xf5   : > { %v580_v13 = vadd.f32 %v579_v10, %v386_v31  ;;  %v672_v16 = vadd.f32 %v611_v5, %v610_v9  ;;  %v612_v20 = vmax.f32 %v578_v7, 0.0  ;;  %v540_v38 = vadd.f32 %v539_v21, %v346_v61  ;;  %v341_v31 = vpop.permute.xlu1 %340 }
  0xf6   : > { %v596_v0 = vmax.f32 %v538_v28, 0.0  ;;  %v544_v61 = vadd.f32 %v1266_v30, %v351_v17  ;;  %v666_v5 = vadd.f32 %v607_v48, %v606_v3  ;;  %v593_v7 = vmax.f32 %v530_v62, 0.0  ;;  %v626_v3 = vld [vmem:[#allocation2 + $0x60] sm:$0xff] }
  0xf7   : > { %v613_v22 = vmax.f32 %v580_v13, 0.0  ;;  %673 = vadd.xlane.f32.xlu1 %v672_v16  ;;  %v597_v52 = vmax.f32 %v540_v38, 0.0  ;;  %v602_v9 = vmax.f32 %v554_v2, 0.0  ;;  %v508_v30 = vadd.f32 %v1272_v34, %v316_v54 }
  0xf8   : > { %v598_v40 = vmax.f32 %v544_v61, 0.0  ;;  %v534_v33 = vadd.f32 %v1290_v59, %v341_v31  ;;  %v536_v10 = vadd.f32 %v1292_v63, %v341_v31  ;;  %v589_v12 = vmax.f32 %v520_v6, 0.0  ;;  %v628_v31 = vld [vmem:[#allocation2 + $0x70] sm:$0xff]  ;;  %v621_v61 = vld [vmem:[#allocation2 + $0x38] sm:$0xff] }
  0xf9   : > { %v675_v27 = vadd.f32 %v613_v22, %v612_v20  ;;  %v331_v56 = vpop.permute.xlu1 %330  ;;  %v651_v8 = vadd.f32 %v597_v52, %v596_v0  ;;  %v660_v11 = vadd.f32 %v603_v4, %v602_v9  ;;  %v645_v13 = vadd.f32 %v593_v7, %v592_v57  ;;  %v619_v57 = vld [vmem:[#allocation2 + $0x28] sm:$0xff] }
  0xfa   : > { %v654_v15 = vadd.f32 %v599_v1, %v598_v40  ;;  %v524_v16 = vadd.f32 %v1286_v49, %v331_v56  ;;  %v526_v17 = vadd.f32 %v1288_v51, %v331_v56  ;;  %v594_v18 = vmax.f32 %v534_v33, 0.0  ;;  %v622_v33 = vld [vmem:[#allocation2 + $0x40] sm:$0xff] }
  0xfb   : > { %676 = vadd.xlane.f32.xlu0 %v675_v27  ;;  %664 = vadd.xlane.f32.xlu1 %v663_v37  ;;  %v595_v34 = vmax.f32 %v536_v10, 0.0  ;;  %v584_v19 = vmax.f32 %v508_v30, 0.0  ;;  %v585_v59 = vmax.f32 %v510_v46, 0.0  ;;  %v639_v20 = vadd.f32 %v589_v12, %v588_v43 }
  0xfc   : > { %v590_v21 = vmax.f32 %v524_v16, 0.0  ;;  %v591_v23 = vmax.f32 %v526_v17, 0.0 }
  0xfd   : > { %v321_v14 = vpop.permute.xlu1 %320  ;;  %v648_v24 = vadd.f32 %v595_v34, %v594_v18  ;;  %v633_v25 = vadd.f32 %v585_v59, %v584_v19  ;;  %v615_v18 = vld [vmem:[#allocation2 + $0x8] sm:$0xff] }
  0xfe   : > { %v514_v63 = vadd.f32 %v1276_v39, %v321_v14  ;;  %v516_v36 = vadd.f32 %v1280_v41, %v321_v14  ;;  %v642_v28 = vadd.f32 %v591_v23, %v590_v21  ;;  %v618_v21 = vld [vmem:[#allocation2 + $0x20] sm:$0xff] }
  0xff   : > { %670 = vadd.xlane.f32.xlu0 %v669_v53  ;;  %658 = vadd.xlane.f32.xlu1 %v657_v55  ;;  %v627_v55 = vld [vmem:[#allocation2 + $0x68] sm:$0xff] }
 0x100   : > { %v586_v51 = vmax.f32 %v514_v63, 0.0  ;;  %v587_v26 = vmax.f32 %v516_v36, 0.0 }
 0x101   : > { %v311_v22 = vpop.permute.xlu1 %310 }
 0x102   : > { %v504_v49 = vadd.f32 %v1264_v29, %v311_v22  ;;  %v506_v27 = vadd.f32 %v1268_v32, %v311_v22  ;;  %v636_v37 = vadd.f32 %v587_v26, %v586_v51  ;;  %v616_v26 = vld [vmem:[#allocation2 + $0x10] sm:$0xff] }
 0x103   : > { %667 = vadd.xlane.f32.xlu0 %v666_v5  ;;  %652 = vadd.xlane.f32.xlu1 %v651_v8  ;;  %v624_v5 = vld [vmem:[#allocation2 + $0x50] sm:$0xff] }
 0x104   : > { %v582_v38 = vmax.f32 %v504_v49, 0.0  ;;  %v583_v39 = vmax.f32 %v506_v27, 0.0 }
 0x106   : > { %v630_v41 = vadd.f32 %v583_v39, %v582_v38 }
 0x107   : > { %661 = vadd.xlane.f32.xlu0 %v660_v11  ;;  %646 = vadd.xlane.f32.xlu1 %v645_v13  ;;  %v617_v11 = vld [vmem:[#allocation2 + $0x18] sm:$0xff] }
 0x10b   : > { %655 = vadd.xlane.f32.xlu0 %v654_v15  ;;  %640 = vadd.xlane.f32.xlu1 %v639_v20  ;;  %v620_v15 = vld [vmem:[#allocation2 + $0x30] sm:$0xff] }
 0x10f   : > { %649 = vadd.xlane.f32.xlu0 %v648_v24  ;;  %634 = vadd.xlane.f32.xlu1 %v633_v25 }
 0x113   : > { %643 = vadd.xlane.f32.xlu0 %v642_v28 }
 0x117   : > { %637 = vadd.xlane.f32.xlu0 %v636_v37 }
 0x11b   : > { %631 = vadd.xlane.f32.xlu0 %v630_v41 }
 0x180   : > { %v674_v29 = vpop.xlane.xlu1 %673 }
 0x181   : > { %v692_v45 = vadd.f32 %v674_v29, %v628_v31 }
 0x183   : > { %709 = vst.msk [vmem:[#allocation2 + $0x70] sm:$0xff] %vm258_vm2, %v692_v45 }
 0x184   : > { %v677_v32 = vpop.xlane.xlu0 %676  ;;  %v665_v48 = vpop.xlane.xlu1 %664 }
 0x185   : > { %v693_v35 = vadd.f32 %v677_v32, %v629_v47  ;;  %v689_v53 = vadd.f32 %v665_v48, %v625_v58 }
 0x187   : > { %710 = vst.msk [vmem:[#allocation2 + $0x78] sm:$0xff] %vm258_vm2, %v693_v35  ;;  %706 = vst.msk [vmem:[#allocation2 + $0x58] sm:$0xff] %vm258_vm2, %v689_v53 }
 0x188   : > { %v671_v62 = vpop.xlane.xlu0 %670  ;;  %v659_v52 = vpop.xlane.xlu1 %658 }
 0x189   : > { %v691_v0 = vadd.f32 %v671_v62, %v627_v55  ;;  %v687_v2 = vadd.f32 %v659_v52, %v623_v60 }
 0x18a   : > { %v728_v54 = vld [vmem:[#allocation2 + $0x70] sm:$0xff] }
 0x18b   : > { %708 = vst.msk [vmem:[#allocation2 + $0x68] sm:$0xff] %vm258_vm2, %v691_v0  ;;  %704 = vst.msk [vmem:[#allocation2 + $0x48] sm:$0xff] %vm258_vm2, %v687_v2  ;;  %v744_v1 = vmul.f32 0.00390625, %v728_v54 }
 0x18c   : > { %v668_v50 = vpop.xlane.xlu0 %667  ;;  %v653_v4 = vpop.xlane.xlu1 %652 }
 0x18d   : > { %v690_v56 = vadd.f32 %v668_v50, %v626_v3  ;;  %v685_v42 = vadd.f32 %v653_v4, %v621_v61  ;;  %v747_v61 = vld [vmem:[%s1365_s3 + $0x8] sm:$0xff]  ;;  %v825_v50 = vlaneseq }
 0x18e   : > { %v729_v6 = vld [vmem:[#allocation2 + $0x78] sm:$0xff] }
 0x18f   : > { %707 = vst.msk [vmem:[#allocation2 + $0x60] sm:$0xff] %vm258_vm2, %v690_v56  ;;  %v745_v7 = vmul.f32 0.00390625, %v729_v6  ;;  %702 = vst.msk [vmem:[#allocation2 + $0x38] sm:$0xff] %vm258_vm2, %v685_v42  ;;  %v725_v17 = vld [vmem:[#allocation2 + $0x58] sm:$0xff]  ;;  %v826_v56 = vshrl.u32 %v825_v50, 7  ;;  %v749_v42 = vld [vmem:[%s1366_s4 + $0x8] sm:$0xff] }
 0x190   : > { %v662_v8 = vpop.xlane.xlu0 %661  ;;  %v647_v40 = vpop.xlane.xlu1 %646  ;;  %v741_v63 = vmul.f32 0.00390625, %v725_v17  ;;  %v748_v6 = vld [vmem:[%s1366_s4] sm:$0xff] }
 0x191   : > { %v688_v9 = vadd.f32 %v662_v8, %v624_v5  ;;  %1005 = vmatprep.subr.mxu1 %v745_v7  ;;  %v683_v30 = vadd.f32 %v647_v40, %v619_v57  ;;  %v827_v4 = vadd.s32 8, %v826_v56  ;;  %vm838_vm4 = vcmp.ge.s32.totalorder %v826_v56, 2 }
 0x192   : > { %1006 = vmatpush3.msra.mxu1 %v745_v7  ;;  %v727_v10 = vld [vmem:[#allocation2 + $0x68] sm:$0xff]  ;;  %vm875_vm5 = vcmp.eq.s32.totalorder %v826_v56, 0 }
 0x193   : > { %705 = vst.msk [vmem:[#allocation2 + $0x50] sm:$0xff] %vm258_vm2, %v688_v9  ;;  %1007 = vmatprep.subr.mxu1 %v744_v1  ;;  %v743_v43 = vmul.f32 0.00390625, %v727_v10  ;;  %700 = vst.msk [vmem:[#allocation2 + $0x28] sm:$0xff] %vm258_vm2, %v683_v30  ;;  %v723_v23 = vld [vmem:[#allocation2 + $0x48] sm:$0xff]  ;;  %vm841_vm3 = vcmp.lt.s32.totalorder %v827_v4, 11  ;;  %vm882_vm6 = vcmp.ge.s32.totalorder %v827_v4, 15 }
 0x194   : > { %1008 = vmatpush3.msra.mxu1 %v744_v1  ;;  %v656_v12 = vpop.xlane.xlu0 %655  ;;  %v641_v13 = vpop.xlane.xlu1 %640  ;;  %v739_v51 = vmul.f32 0.00390625, %v723_v23 }
 0x195   : > { %v686_v46 = vadd.f32 %v656_v12, %v622_v33  ;;  %1009 = vmatprep.subr.mxu1 %v743_v43  ;;  %v681_v14 = vadd.f32 %v641_v13, %v617_v11 }
 0x196   : > { %1010 = vmatpush3.msra.mxu1 %v743_v43  ;;  %v726_v16 = vld [vmem:[#allocation2 + $0x60] sm:$0xff]  ;;  %v721_v28 = vld [vmem:[#allocation2 + $0x38] sm:$0xff] }
 0x197   : > { %703 = vst.msk [vmem:[#allocation2 + $0x40] sm:$0xff] %vm258_vm2, %v686_v46  ;;  %v742_v34 = vmul.f32 0.00390625, %v726_v16  ;;  %698 = vst.msk [vmem:[#allocation2 + $0x18] sm:$0xff] %vm258_vm2, %v681_v14  ;;  %v737_v41 = vmul.f32 0.00390625, %v721_v28 }
 0x198   : > { %v650_v19 = vpop.xlane.xlu0 %649  ;;  %v635_v20 = vpop.xlane.xlu1 %634 }
 0x199   : > { %v684_v59 = vadd.f32 %v650_v19, %v620_v15  ;;  %1011 = vmatprep.subr.mxu1 %v742_v34  ;;  %v679_v36 = vadd.f32 %v635_v20, %v615_v18 }
 0x19a   : > { %1012 = vmatpush3.msra.mxu1 %v742_v34  ;;  %v724_v22 = vld [vmem:[#allocation2 + $0x50] sm:$0xff]  ;;  %v719_v29 = vld [vmem:[#allocation2 + $0x28] sm:$0xff] }
 0x19b   : > { %701 = vst.msk [vmem:[#allocation2 + $0x30] sm:$0xff] %vm258_vm2, %v684_v59  ;;  %1013 = vmatprep.subr.mxu1 %v741_v63  ;;  %v740_v24 = vmul.f32 0.00390625, %v724_v22  ;;  %696 = vst.msk [vmem:[#allocation2 + $0x8] sm:$0xff] %vm258_vm2, %v679_v36  ;;  %v735_v32 = vmul.f32 0.00390625, %v719_v29 }
 0x19c   : > { %1014 = vmatpush3.msra.mxu1 %v741_v63  ;;  %v644_v25 = vpop.xlane.xlu0 %643 }
 0x19d   : > { %v682_v49 = vadd.f32 %v644_v25, %v618_v21  ;;  %1015 = vmatprep.subr.mxu1 %v740_v24 }
 0x19e   : > { %1016 = vmatpush3.msra.mxu1 %v740_v24  ;;  %v722_v27 = vld [vmem:[#allocation2 + $0x40] sm:$0xff]  ;;  %v717_v48 = vld [vmem:[#allocation2 + $0x18] sm:$0xff] }
 0x19f   : > { %699 = vst.msk [vmem:[#allocation2 + $0x20] sm:$0xff] %vm258_vm2, %v682_v49  ;;  %1017 = vmatprep.subr.mxu1 %v739_v51  ;;  %v738_v38 = vmul.f32 0.00390625, %v722_v27  ;;  %v733_v55 = vmul.f32 0.00390625, %v717_v48 }
 0x1a0   : > { %1018 = vmatpush3.msra.mxu1 %v739_v51  ;;  %v638_v39 = vpop.xlane.xlu0 %637 }
 0x1a1   : > { %v680_v37 = vadd.f32 %v638_v39, %v616_v26  ;;  %1019 = vmatprep.subr.mxu1 %v738_v38 }
 0x1a2   : > { %1020 = vmatpush3.msra.mxu1 %v738_v38  ;;  %v720_v31 = vld [vmem:[#allocation2 + $0x30] sm:$0xff]  ;;  %v715_v62 = vld [vmem:[#allocation2 + $0x8] sm:$0xff] }
 0x1a3   : > { %697 = vst.msk [vmem:[#allocation2 + $0x10] sm:$0xff] %vm258_vm2, %v680_v37  ;;  %1021 = vmatprep.subr.mxu1 %v737_v41  ;;  %v736_v45 = vmul.f32 0.00390625, %v720_v31  ;;  %v731_v52 = vmul.f32 0.00390625, %v715_v62 }
 0x1a4   : > { %1022 = vmatpush3.msra.mxu1 %v737_v41  ;;  %v632_v47 = vpop.xlane.xlu0 %631 }
 0x1a5   : > { %v678_v58 = vadd.f32 %v632_v47, %v614_v44  ;;  %1023 = vmatprep.subr.mxu1 %v736_v45 }
 0x1a6   : > { %1024 = vmatpush3.msra.mxu1 %v736_v45  ;;  %v718_v35 = vld [vmem:[#allocation2 + $0x20] sm:$0xff] }
 0x1a7   : > { %695 = vst.msk [vmem:[#allocation2] sm:$0xff] %vm258_vm2, %v678_v58  ;;  %1025 = vmatprep.subr.mxu1 %v735_v32  ;;  %v734_v53 = vmul.f32 0.00390625, %v718_v35 }
 0x1a8   : > { %1026 = vmatpush3.msra.mxu1 %v735_v32 }
 0x1a9   : > { %1027 = vmatprep.subr.mxu1 %v734_v53 }
 0x1aa   : > { %1028 = vmatpush3.msra.mxu1 %v734_v53  ;;  %v716_v60 = vld [vmem:[#allocation2 + $0x10] sm:$0xff] }
 0x1ab   : > { %1029 = vmatprep.subr.mxu1 %v733_v55  ;;  %v732_v0 = vmul.f32 0.00390625, %v716_v60 }
 0x1ac   : > { %1030 = vmatpush3.msra.mxu1 %v733_v55 }
 0x1ad   : > { %1031 = vmatprep.subr.mxu1 %v732_v0 }
 0x1ae   : > { %1032 = vmatpush3.msra.mxu1 %v732_v0  ;;  %v714_v2 = vld [vmem:[#allocation2] sm:$0xff] }
 0x1af   : > { %1033 = vmatprep.subr.mxu1 %v731_v52  ;;  %v730_v3 = vmul.f32 0.00390625, %v714_v2 }
 0x1b0   : > { %1034 = vmatpush3.msra.mxu1 %v731_v52 }
 0x1b1   : > { %1035 = vmatprep.subr.mxu1 %v730_v3 }
 0x1b2   : > { %1036 = vmatpush3.msra.mxu1 %v730_v3 }
 0x1b3   : > { %1038 = vmatmul.mubr.f32.vlgmr.msra.gmra.mxu1 %v747_v61 }
 0x273   : > { %v1039_v5 = vpop.f32.mrf.mxu1 }
 0x274   : > { %v822_v54 = vadd.f32 %v1039_v5, %v749_v42 }
 0x275   : > { %v816_v57 = vpop.f32.mrf.mxu1 }
 0x276   : > { %v845_v7 = vsel %vm841_vm3, %v822_v54, -1e+30  ;;  %v817_v8 = vadd.f32 %v816_v57, %v748_v6 }
 0x277   : > { %v847_v1 = vsel %vm258_vm2, %v845_v7, -inf }
 0x278   : > { %v828_v9 = vsub.f32 0.0, %v817_v8  ;;  %v844_v40 = vsel %vm838_vm4, %v817_v8, -1e+30 }
 0x279   : > { %v846_v30 = vsel %vm258_vm2, %v844_v40, -inf }
 0x27a   : > { %v830_v33 = vmul.f32 1.442695, %v828_v9  ;;  %v848_v10 = vmax.f32 %v846_v30, %v847_v1 }
 0x27c   : > { %1078 = vpow2.f32 %v830_v33  ;;  %v849_v11 = vrot.slane %v848_v10, 4 }
 0x27e   : > { %v850_v43 = vmax.f32 %v848_v10, %v849_v11 }
 0x280   : > { %v851_v12 = vrot.slane %v850_v43, 2 }
 0x282   : > { %v852_v46 = vmax.f32 %v850_v43, %v851_v12 }
 0x284   : > { %v853_v13 = vrot.slane %v852_v46, 1 }
 0x286   : > { %v854_v14 = vmax.f32 %v852_v46, %v853_v13 }
 0x288   : > { %v855_v15 = vsub.f32 %v844_v40, %v854_v14  ;;  %v856_v16 = vsub.f32 %v845_v7, %v854_v14 }
 0x289   : > { %v1079_v17 = vpop.eup %1078 }
 0x28a   : > { %v834_v18 = vadd.f32 1.0, %v1079_v17  ;;  %v857_v34 = vmul.f32 1.442695, %v855_v15  ;;  %v859_v19 = vmul.f32 1.442695, %v856_v16 }
 0x28c   : > { %1080 = vrcp.f32 %v834_v18 }
 0x28d   : > { %1082 = vpow2.f32 %v857_v34 }
 0x28e   : > { %1084 = vpow2.f32 %v859_v19 }
 0x299   : > { %v1081_v59 = vpop.eup %1080 }
 0x29a   : > { %v1083_v20 = vpop.eup %1082  ;;  %v877_v63 = vsel %vm875_vm5, %v1081_v59, %v817_v8 }
 0x29b   : > { %v1085_v36 = vpop.eup %1084  ;;  %v861_v21 = vsel %vm838_vm4, %v1083_v20, 0.0 }
 0x29c   : > { %v862_v22 = vsel %vm841_vm3, %v1085_v36, 0.0  ;;  %v863_v23 = vsel %vm258_vm2, %v861_v21, 0.0 }
 0x29d   : > { %v864_v24 = vsel %vm258_vm2, %v862_v22, 0.0 }
 0x29e   : > { %v865_v25 = vadd.f32 %v864_v24, %v863_v23 }
 0x2a0   : > { %v866_v49 = vrot.slane %v865_v25, 4 }
 0x2a2   : > { %v867_v51 = vadd.f32 %v866_v49, %v865_v25 }
 0x2a4   : > { %v868_v26 = vrot.slane %v867_v51, 2 }
 0x2a6   : > { %v869_v27 = vadd.f32 %v868_v26, %v867_v51 }
 0x2a8   : > { %v870_v28 = vrot.slane %v869_v27, 1 }
 0x2aa   : > { %v871_v38 = vadd.f32 %v870_v28, %v869_v27 }
 0x2ac   : > { %1086 = vrcp.f32 %v871_v38 }
 0x2b9   : > { %v1087_v39 = vpop.eup %1086 }
 0x2ba   : > { %v873_v37 = vmul.f32 %v1087_v39, %v861_v21  ;;  %v874_v41 = vmul.f32 %v1087_v39, %v862_v22 }
 0x2bc   : > { %v879_v44 = vsel %vm838_vm4, %v873_v37, %v877_v63  ;;  %v880_v31 = vsel %vm841_vm3, %v874_v41, %v822_v54 }
 0x2bd   : > { %v884_v29 = vsel %vm882_vm6, 0.0, %v880_v31  ;;  %885 = vst.msk [vmem:[%s252_s22] sm:$0xff] %vm258_vm2, %v879_v44 }
 0x2be   : > { %886 = vst.msk [vmem:[%s252_s22 + $0x8] sm:$0xff] %vm258_vm2, %v884_v29 }
 0x2bf PF: > { %s15_s20 = sadd.s32 1, %s1110_s20   ;;  %s1368_s18 = smov %s1106_s19 }
 0x2c0   : > { %p12_p5 = scmp.ge.s32.totalorder %s15_s20, 4   ;;  %s1369_s19 = smov %s1371_s21 }
 0x2c2   :  { %14 = sbr.rel (!%p12_p5) target bundleno = 2 (0x2), region = 78 }

</bundles_post_ra>
